<compile_context>
chip_gen: v7x
topology: tpu7x:2x2x1
jax: 0.10.0
libtpu: 0.0.40
codegen_flags: <defaults>
</compile_context>

<pallas_src>
import functools

import jax
import jax.numpy as jnp
from jax.experimental import pallas as pl
from jax.experimental.pallas import tpu as pltpu

HIDDEN = 32        # params['hidden_size']
BATCH = 8          # number of optimizee coordinates in the demo
IN_FEATS = 2       # use_second == 1  ->  LSTMCell(2, hidden)
XPAD = 8           # grad/second input padded to 8 features (sublane-aligned weight rows)
GATES = 4 * HIDDEN                     # 128 = one lane-tile
PARAM_ROWS = 144                       # 40 (W1) + 64 (W2) + 32 (W3) + 3 biases + 5 pad


def _round_up(x, m):
    return (x + m - 1) // m * m


# -----------------------------------------------------------------------------
# Kernel
# -----------------------------------------------------------------------------
def optimizer_kernel(x_ref, s_ref, wb_ref, o_ref):
    """One Twin-L2O optimizer step for a (tm,)-row batch tile.

    x_ref : (tm, 8)    [inp, second, 0...]
    s_ref : (tm, 128)  [h0 | c0 | h1 | c1]
    wb_ref: (144, 128) rows 0:40  -> fused W1 ([W_ih1^T ; 0 ; W_hh1^T])
                       rows 40:104-> fused W2 ([W_ih2^T ; W_hh2^T])
                       rows 104:136 -> W_out^T zero-padded to 128 cols
                       rows 136/137/138 -> b1, b2, b_out (lane-padded)
    o_ref : (tm, 256)  [h0' | c0' | h1' | c1' | head(128, col 0 valid)]
    """
    H = HIDDEN
    x = x_ref[...]
    s = s_ref[...]
    wb = wb_ref[...]

    h0 = s[:, 0:H]
    c0 = s[:, H:2 * H]
    h1 = s[:, 2 * H:3 * H]
    c1 = s[:, 3 * H:4 * H]

    w1 = wb[0:XPAD + H, :]                      # (40, 128)
    w2 = wb[XPAD + H:XPAD + 3 * H, :]           # (64, 128)
    w3 = wb[XPAD + 3 * H:XPAD + 4 * H, :]       # (32, 128)
    b1 = wb[136:137, :]                         # (1, 128)
    b2 = wb[137:138, :]
    b3 = wb[138:139, :]

    # ---- LSTMCell 1: fused [x_pad | h0] @ W1 + b1 (PyTorch gate order i,f,g,o) ----
    g1 = jnp.dot(jnp.concatenate([x, h0], axis=1), w1,
                 preferred_element_type=jnp.float32) + b1
    sg1 = jax.nn.sigmoid(g1)                    # full-vreg EUP op; slice afterwards
    th1 = jnp.tanh(g1)
    c0n = sg1[:, H:2 * H] * c0 + sg1[:, 0:H] * th1[:, 2 * H:3 * H]
    h0n = sg1[:, 3 * H:4 * H] * jnp.tanh(c0n)

    # ---- LSTMCell 2: fused [h0' | h1] @ W2 + b2 ----
    g2 = jnp.dot(jnp.concatenate([h0n, h1], axis=1), w2,
                 preferred_element_type=jnp.float32) + b2
    sg2 = jax.nn.sigmoid(g2)
    th2 = jnp.tanh(g2)
    c1n = sg2[:, H:2 * H] * c1 + sg2[:, 0:H] * th2[:, 2 * H:3 * H]
    h1n = sg2[:, 3 * H:4 * H] * jnp.tanh(c1n)

    # ---- Linear head, produced lane-dense (only column 0 is meaningful) ----
    head = jnp.dot(h1n, w3, preferred_element_type=jnp.float32) + b3   # (tm, 128)

    # Single lane-dense (tm, 256) store -> one unmasked output DMA.
    o_ref[...] = jnp.concatenate([h0n, c0n, h1n, c1n, head], axis=1)


# -----------------------------------------------------------------------------
# Parameter packing (done once, outside the hot path)
# -----------------------------------------------------------------------------
def init_params(key, hidden=HIDDEN, in_feats=IN_FEATS):
    """Deterministic parameter init matching PyTorch shapes (uniform +-1/sqrt(H))."""
    ks = jax.random.split(key, 10)
    bound = 1.0 / jnp.sqrt(jnp.float32(hidden))

    def u(k, shape):
        return jax.random.uniform(k, shape, jnp.float32, -bound, bound)

    return {
        "w_ih1": u(ks[0], (4 * hidden, in_feats)),
        "w_hh1": u(ks[1], (4 * hidden, hidden)),
        "b_ih1": u(ks[2], (4 * hidden,)),
        "b_hh1": u(ks[3], (4 * hidden,)),
        "w_ih2": u(ks[4], (4 * hidden, hidden)),
        "w_hh2": u(ks[5], (4 * hidden, hidden)),
        "b_ih2": u(ks[6], (4 * hidden,)),
        "b_hh2": u(ks[7], (4 * hidden,)),
        "w_out": u(ks[8], (1, hidden)),
        "b_out": u(ks[9], (1,)),
    }


def prepare_params(params):
    """Pre-transpose / fuse / pad all weights into one (144, 128) f32 buffer. Run once."""
    H, G = HIDDEN, GATES
    w1 = jnp.concatenate(
        [params["w_ih1"].T.astype(jnp.float32),                  # (2, 128)
         jnp.zeros((XPAD - IN_FEATS, G), jnp.float32),           # (6, 128) pad rows
         params["w_hh1"].T.astype(jnp.float32)], axis=0)         # (32, 128) -> (40, 128)
    w2 = jnp.concatenate(
        [params["w_ih2"].T, params["w_hh2"].T], axis=0).astype(jnp.float32)   # (64, 128)
    w3 = jnp.pad(params["w_out"].T.astype(jnp.float32), ((0, 0), (0, G - 1)))  # (32, 128)
    b1 = (params["b_ih1"] + params["b_hh1"]).reshape(1, G).astype(jnp.float32)
    b2 = (params["b_ih2"] + params["b_hh2"]).reshape(1, G).astype(jnp.float32)
    b3 = jnp.pad(params["b_out"].reshape(1, 1).astype(jnp.float32), ((0, 0), (0, G - 1)))
    packed = jnp.concatenate([w1, w2, w3, b1, b2, b3], axis=0)    # (139, 128)
    return jnp.pad(packed, ((0, PARAM_ROWS - packed.shape[0]), (0, 0)))  # (144, 128)


# -----------------------------------------------------------------------------
# Forward wrapper
# -----------------------------------------------------------------------------
@jax.jit
def optimizer_forward(inp, second, hidden, cell, packed_params):
    """Twin-L2O optimizer forward. hidden/cell are tuples (layer0, layer1) of (N, H)."""
    H, G = HIDDEN, GATES
    n = inp.shape[0]
    tm = min(256, _round_up(n, 8))          # batch tile (rows per grid step)
    npad = _round_up(n, tm)

    x = jnp.concatenate(
        [inp.astype(jnp.float32), second.astype(jnp.float32),
         jnp.zeros((n, XPAD - IN_FEATS), jnp.float32)], axis=1)            # (n, 8)
    states = jnp.concatenate(
        [hidden[0], cell[0], hidden[1], cell[1]], axis=1).astype(jnp.float32)  # (n, 128)
    if npad != n:
        x = jnp.pad(x, ((0, npad - n), (0, 0)))
        states = jnp.pad(states, ((0, npad - n), (0, 0)))

    slab = pl.pallas_call(
        optimizer_kernel,
        out_shape=jax.ShapeDtypeStruct((npad, 2 * G), jnp.float32),
        grid=(npad // tm,),
        in_specs=[
            pl.BlockSpec((tm, XPAD), lambda i: (i, 0)),
            pl.BlockSpec((tm, G), lambda i: (i, 0)),
            pl.BlockSpec((PARAM_ROWS, G), lambda i: (0, 0)),   # weights stay resident
        ],
        out_specs=pl.BlockSpec((tm, 2 * G), lambda i: (i, 0)),
        compiler_params=pltpu.CompilerParams(
            dimension_semantics=("parallel",)),                # megacore split on v7x
    )(x, states, packed_params)

    h0n = slab[:n, 0:H]
    c0n = slab[:n, H:2 * H]
    h1n = slab[:n, 2 * H:3 * H]
    c1n = slab[:n, 3 * H:4 * H]
    out = slab[:n, G:G + 1]
    return out, (h0n, h1n), (c0n, c1n)


# -----------------------------------------------------------------------------
# Pure-JAX reference (mirrors the PyTorch forward)
# -----------------------------------------------------------------------------
def optimizer_forward_ref(inp, second, hidden, cell, params):
    x = jnp.concatenate([inp, second], axis=1).astype(jnp.float32)

    def cell_fn(x, h, c, w_ih, w_hh, b_ih, b_hh):
        g = x @ w_ih.T + b_ih + h @ w_hh.T + b_hh
        i, f, gg, o = jnp.split(g, 4, axis=1)
        c_new = jax.nn.sigmoid(f) * c + jax.nn.sigmoid(i) * jnp.tanh(gg)
        h_new = jax.nn.sigmoid(o) * jnp.tanh(c_new)
        return h_new, c_new

    h0, c0 = cell_fn(x, hidden[0], cell[0],
                     params["w_ih1"], params["w_hh1"], params["b_ih1"], params["b_hh1"])
    h1, c1 = cell_fn(h0, hidden[1], cell[1],
                     params["w_ih2"], params["w_hh2"], params["b_ih2"], params["b_hh2"])
    out = h1 @ params["w_out"].T + params["b_out"]
    return out, (h0, h1), (c0, c1)


if __name__ == "__main__":
    key = jax.random.PRNGKey(0)
    k_par, k_inp, k_sec, k_h0, k_h1, k_c0, k_c1 = jax.random.split(key, 7)

    params = init_params(k_par)
    packed = prepare_params(params)            # one-time weight packing

    inp = jax.random.normal(k_inp, (BATCH, 1), jnp.float32)
    second = jax.random.normal(k_sec, (BATCH, 1), jnp.float32)
    hidden = (jax.random.normal(k_h0, (BATCH, HIDDEN), jnp.float32),
              jax.random.normal(k_h1, (BATCH, HIDDEN), jnp.float32))
    cell = (jax.random.normal(k_c0, (BATCH, HIDDEN), jnp.float32),
            jax.random.normal(k_c1, (BATCH, HIDDEN), jnp.float32))

    out, (h0, h1), (c0, c1) = optimizer_forward(inp, second, hidden, cell, packed)
    jax.block_until_ready((out, h0, h1, c0, c1))

    r_out, (r_h0, r_h1), (r_c0, r_c1) = optimizer_forward_ref(inp, second, hidden, cell, params)
    for a, b in ((out, r_out), (h0, r_h0), (h1, r_h1), (c0, r_c0), (c1, r_c1)):
        assert jnp.allclose(a, b, atol=1e-5, rtol=1e-5), "mismatch vs reference"

    print("KERNEL_OK")
</pallas_src>

<mosaic_0001>
module attributes {stable_mosaic.version = 11 : i64} {
  func.func @optimizer_kernel(%arg0: i32, %arg1: memref<8x8xf32, #tpu.memory_space<vmem>>, %arg2: memref<8x128xf32, #tpu.memory_space<vmem>>, %arg3: memref<144x128xf32, #tpu.memory_space<vmem>>, %arg4: memref<8x256xf32, #tpu.memory_space<vmem>>) attributes {dimension_semantics = [#tpu.dimension_semantics<parallel>], iteration_bounds = array<i64: 1>, scalar_prefetch = 0 : i64, scratch_operands = 0 : i64, tpu.core_type = #tpu.core_type<tc>, window_params = [{transform_indices = @transform_0, window_bounds = array<i64: 8, 8>}, {transform_indices = @transform_1, window_bounds = array<i64: 8, 128>}, {pipeline_mode = #tpu.pipeline_mode<synchronous>, transform_indices = @transform_2, window_bounds = array<i64: 144, 128>}, {transform_indices = @transform_3, window_bounds = array<i64: 8, 256>}]} {
    %c0 = arith.constant 0 : index
    %c0_0 = arith.constant 0 : index
    %0 = vector.load %arg1[%c0, %c0_0] : memref<8x8xf32, #tpu.memory_space<vmem>>, vector<8x8xf32>
    %c0_1 = arith.constant 0 : index
    %c0_2 = arith.constant 0 : index
    %1 = vector.load %arg2[%c0_1, %c0_2] : memref<8x128xf32, #tpu.memory_space<vmem>>, vector<8x128xf32>
    %c0_3 = arith.constant 0 : index
    %c0_4 = arith.constant 0 : index
    %2 = vector.load %arg3[%c0_3, %c0_4] : memref<144x128xf32, #tpu.memory_space<vmem>>, vector<144x128xf32>
    %3 = vector.extract_strided_slice %1 {offsets = [0, 0], sizes = [8, 32], strides = [1, 1]} : vector<8x128xf32> to vector<8x32xf32>
    %4 = vector.extract_strided_slice %1 {offsets = [0, 32], sizes = [8, 32], strides = [1, 1]} : vector<8x128xf32> to vector<8x32xf32>
    %5 = vector.extract_strided_slice %1 {offsets = [0, 64], sizes = [8, 32], strides = [1, 1]} : vector<8x128xf32> to vector<8x32xf32>
    %6 = vector.extract_strided_slice %1 {offsets = [0, 96], sizes = [8, 32], strides = [1, 1]} : vector<8x128xf32> to vector<8x32xf32>
    %7 = vector.extract_strided_slice %2 {offsets = [0, 0], sizes = [40, 128], strides = [1, 1]} : vector<144x128xf32> to vector<40x128xf32>
    %8 = vector.extract_strided_slice %2 {offsets = [40, 0], sizes = [64, 128], strides = [1, 1]} : vector<144x128xf32> to vector<64x128xf32>
    %9 = vector.extract_strided_slice %2 {offsets = [104, 0], sizes = [32, 128], strides = [1, 1]} : vector<144x128xf32> to vector<32x128xf32>
    %10 = vector.extract_strided_slice %2 {offsets = [136, 0], sizes = [1, 128], strides = [1, 1]} : vector<144x128xf32> to vector<1x128xf32>
    %11 = vector.extract_strided_slice %2 {offsets = [137, 0], sizes = [1, 128], strides = [1, 1]} : vector<144x128xf32> to vector<1x128xf32>
    %12 = vector.extract_strided_slice %2 {offsets = [138, 0], sizes = [1, 128], strides = [1, 1]} : vector<144x128xf32> to vector<1x128xf32>
    %13 = tpu.concatenate %0, %3 in 1 : vector<8x8xf32>, vector<8x32xf32> -> vector<8x40xf32>
    %cst = arith.constant dense<0.000000e+00> : vector<8x128xf32>
    %14 = tpu.matmul %13, %7, %cst {dimension_numbers = #tpu.dot_dimension_numbers<[1], [0], [0], [1], [0, 0, 1, 1], [], []>} : vector<8x40xf32>, vector<40x128xf32>, vector<8x128xf32> -> vector<8x128xf32>
    %15 = vector.broadcast %10 : vector<1x128xf32> to vector<8x128xf32>
    %16 = arith.addf %14, %15 : vector<8x128xf32>
    %17 = arith.negf %16 : vector<8x128xf32>
    %18 = math.exp %17 : vector<8x128xf32>
    %cst_5 = arith.constant 1.000000e+00 : f32
    %19 = vector.broadcast %cst_5 : f32 to vector<8x128xf32>
    %20 = arith.addf %19, %18 : vector<8x128xf32>
    %21 = arith.divf %19, %20 : vector<8x128xf32>
    %22 = math.tanh %16 : vector<8x128xf32>
    %23 = vector.extract_strided_slice %21 {offsets = [0, 32], sizes = [8, 32], strides = [1, 1]} : vector<8x128xf32> to vector<8x32xf32>
    %24 = arith.mulf %23, %4 : vector<8x32xf32>
    %25 = vector.extract_strided_slice %21 {offsets = [0, 0], sizes = [8, 32], strides = [1, 1]} : vector<8x128xf32> to vector<8x32xf32>
    %26 = vector.extract_strided_slice %22 {offsets = [0, 64], sizes = [8, 32], strides = [1, 1]} : vector<8x128xf32> to vector<8x32xf32>
    %27 = arith.mulf %25, %26 : vector<8x32xf32>
    %28 = arith.addf %24, %27 : vector<8x32xf32>
    %29 = vector.extract_strided_slice %21 {offsets = [0, 96], sizes = [8, 32], strides = [1, 1]} : vector<8x128xf32> to vector<8x32xf32>
    %30 = math.tanh %28 : vector<8x32xf32>
    %31 = arith.mulf %29, %30 : vector<8x32xf32>
    %32 = tpu.concatenate %31, %5 in 1 : vector<8x32xf32>, vector<8x32xf32> -> vector<8x64xf32>
    %cst_6 = arith.constant dense<0.000000e+00> : vector<8x128xf32>
    %33 = tpu.matmul %32, %8, %cst_6 {dimension_numbers = #tpu.dot_dimension_numbers<[1], [0], [0], [1], [0, 0, 1, 1], [], []>} : vector<8x64xf32>, vector<64x128xf32>, vector<8x128xf32> -> vector<8x128xf32>
    %34 = vector.broadcast %11 : vector<1x128xf32> to vector<8x128xf32>
    %35 = arith.addf %33, %34 : vector<8x128xf32>
    %36 = arith.negf %35 : vector<8x128xf32>
    %37 = math.exp %36 : vector<8x128xf32>
    %cst_7 = arith.constant 1.000000e+00 : f32
    %38 = vector.broadcast %cst_7 : f32 to vector<8x128xf32>
    %39 = arith.addf %38, %37 : vector<8x128xf32>
    %40 = arith.divf %38, %39 : vector<8x128xf32>
    %41 = math.tanh %35 : vector<8x128xf32>
    %42 = vector.extract_strided_slice %40 {offsets = [0, 32], sizes = [8, 32], strides = [1, 1]} : vector<8x128xf32> to vector<8x32xf32>
    %43 = arith.mulf %42, %6 : vector<8x32xf32>
    %44 = vector.extract_strided_slice %40 {offsets = [0, 0], sizes = [8, 32], strides = [1, 1]} : vector<8x128xf32> to vector<8x32xf32>
    %45 = vector.extract_strided_slice %41 {offsets = [0, 64], sizes = [8, 32], strides = [1, 1]} : vector<8x128xf32> to vector<8x32xf32>
    %46 = arith.mulf %44, %45 : vector<8x32xf32>
    %47 = arith.addf %43, %46 : vector<8x32xf32>
    %48 = vector.extract_strided_slice %40 {offsets = [0, 96], sizes = [8, 32], strides = [1, 1]} : vector<8x128xf32> to vector<8x32xf32>
    %49 = math.tanh %47 : vector<8x32xf32>
    %50 = arith.mulf %48, %49 : vector<8x32xf32>
    %cst_8 = arith.constant dense<0.000000e+00> : vector<8x128xf32>
    %51 = tpu.matmul %50, %9, %cst_8 {dimension_numbers = #tpu.dot_dimension_numbers<[1], [0], [0], [1], [0, 0, 1, 1], [], []>} : vector<8x32xf32>, vector<32x128xf32>, vector<8x128xf32> -> vector<8x128xf32>
    %52 = vector.broadcast %12 : vector<1x128xf32> to vector<8x128xf32>
    %53 = arith.addf %51, %52 : vector<8x128xf32>
    %54 = tpu.concatenate %31, %28, %50, %47, %53 in 1 : vector<8x32xf32>, vector<8x32xf32>, vector<8x32xf32>, vector<8x32xf32>, vector<8x128xf32> -> vector<8x256xf32>
    %c0_9 = arith.constant 0 : index
    %c0_10 = arith.constant 0 : index
    %55 = vector.load %arg4[%c0_9, %c0_10] : memref<8x256xf32, #tpu.memory_space<vmem>>, vector<8x256xf32>
    tpu.vector_store %arg4[%c0_9, %c0_10], %54 {strides = array<i32>} : memref<8x256xf32, #tpu.memory_space<vmem>>, vector<8x256xf32>,
    return
  }
  func.func @transform_0(%arg0: i32) -> (i32, i32) {
    %c0_i32 = arith.constant 0 : i32
    %c0_i32_0 = arith.constant 0 : i32
    return %arg0, %c0_i32 : i32, i32
  }
  func.func @transform_1(%arg0: i32) -> (i32, i32) {
    %c0_i32 = arith.constant 0 : i32
    %c0_i32_0 = arith.constant 0 : i32
    return %arg0, %c0_i32 : i32, i32
  }
  func.func @transform_2(%arg0: i32) -> (i32, i32) {
    %c0_i32 = arith.constant 0 : i32
    %c0_i32_0 = arith.constant 0 : i32
    %c0_i32_1 = arith.constant 0 : i32
    return %c0_i32, %c0_i32_0 : i32, i32
  }
  func.func @transform_3(%arg0: i32) -> (i32, i32) {
    %c0_i32 = arith.constant 0 : i32
    %c0_i32_0 = arith.constant 0 : i32
    return %arg0, %c0_i32 : i32, i32
  }
}

</mosaic_0001>

<bundles_post_ra>
// kernel: optimizer_forward.1
= control target key start
LH: loop header
LB: loop body
LE: loop exit
PB: predicated region body
PF: predicated region fallthrough
CT: control target
= control target key end

     0   :  { %8 = vsyncpa [#allocation3], 0  ;;  %s508_s12 = smov [#allocation2]   ;;  %s609_s0 = inlined_call_operand.vmem [shape: f32[8,8], index: 0, kind: input, shape index: {}]   ;;  %s610_s1 = inlined_call_operand.vmem [shape: f32[8,128], index: 1, kind: input, shape index: {}]   ;;  %s611_s2 = inlined_call_operand.hbm [shape: f32[144,128], index: 2, kind: input, shape index: {}]   ;;  %s612_s3 = inlined_call_operand.vmem [shape: f32[8,256], index: 3, kind: output, shape index: {}]  }
   0x1   :  { %s18_s13 = sshll.u32 %s508_s12, 4  ;;  %s484_s16 = scalar_lea.hbm %s611_s2, 2304  ;;  %s19_s13 = int_to_ptr.vmem [resolvable:$true] %s18_s13 }
   0x2   :  { %p485_p0 = scmp.ne.s32.totalorder %s611_s2, %s484_s16  ;;  %p488_p1 = scmp.lt.u32.totalorder %s484_s16, %s611_s2 }
   0x4   :  { %p490_p2 = pnand %p488_p1, %p485_p0 }
   0x6   :  { %493 = shalt.err (!%p490_p2)
}
   0x7   :  { %s494_s21 = scalar_lea.vmem %s19_s13, 2304  ;;  %p499_p4 = scmp.lt.s32.totalorder %s19_s13, %s19_s13 }
   0x8   :  { %p495_p3 = scmp.ne.s32.totalorder %s19_s13, %s494_s21  ;;  %p500_p5 = scmp.lt.s32.totalorder %s494_s21, %s494_s21 }
   0xa   :  { %p501_p6 = por %p500_p5, %p499_p4 }
   0xc   :  { %p502_p7 = pnand %p501_p6, %p495_p3 }
   0xe   :  { %505 = shalt.err (!%p502_p7)
}
   0xf   :  { %s509_s22 = smov 128   ;;  %s510_s23 = smov 8  }
  0x10   :  { %24 = dma.hbm_to_vmem [thread:$0]  %s611_s2, 2304, %s19_s13, [#allocation3], %s509_s22, %s509_s22, %s510_s23  }
  0x11   :  { %506 = dma.done.wait [#allocation3], 2304  }
  0x12   :  { %507 = vsyncadd [#allocation3], 4294964992  ;;  %v511_v0 = vmov 0.0|0.0   ;;  %vm512_vm0 = vmmov 0   ;;  %v513_v1 = vmov 0.0   ;;  %v556_v2 = vld [vmem:[%s610_s1] sm:$0xff]  ;;  %v54_v13 = vlaneseq }
  0x13   :  { %435 = vmatprep.subr.bf16.mxu0 %v511_v0  ;;  %402 = vmatprep.mubr.msk.f32.mxu0 %vm512_vm0, %v513_v1  ;;  %v30_v3 = vld [vmem:[#allocation2] sm:$0xff]  ;;  %v31_v4 = vld [vmem:[#allocation2 + $0x8] sm:$0xff]  ;;  %v32_v6 = vld [vmem:[#allocation2 + $0x10] sm:$0xff]  ;;  %vm52_vm1 = vcmask 64512   ;;  %vm58_vm2 = vcmask 326656   ;;  %s515_s28 = smov 32  }
  0x14   :  { %441 = vmatprep.subr.bf16.mxu1 %v511_v0  ;;  %421 = vmatprep.mubr.msk.f32.mxu1 %vm512_vm0, %v513_v1  ;;  %v436_v5 = vpack.c.bf16 %v31_v4, %v30_v3  ;;  %v33_v7 = vld [vmem:[#allocation2 + $0x18] sm:$0xff]  ;;  %v34_v9 = vld [vmem:[#allocation2 + $0x20] sm:$0xff]  ;;  %v565_v14 = vshrl.u32 %v54_v13, 7  ;;  %v568_v16 = vld [vmem:[#allocation2 + $0x88] sm:$0xff]  ;;  %s516_s29 = smov 96   ;;  %vm163_vm3 = vcmask 261120  }
  0x15   :  { %49 = vrot.lane.b32.xlu0 %v556_v2, %s510_s23  ;;  %v439_v8 = vpack.c.bf16 %v33_v7, %v32_v6  ;;  %v28_v10 = vld [vmem:[%s609_s0] sm:$0xff]  ;;  %s514_s0 = smov 64   ;;  %v35_v31 = vld [vmem:[#allocation2 + $0x28] sm:$0xff]  ;;  %v36_v32 = vld [vmem:[#allocation2 + $0x30] sm:$0xff]  ;;  %vm169_vm4 = vcmask 523264   ;;  %vm358_vm5 = vcmask 785408  }
  0x16   :  { %437 = vmatpush3.bf16.msra.mxu0 %v436_v5  ;;  %v56_v15 = vsub.s32 0, %v565_v14  ;;  %v37_v33 = vld [vmem:[#allocation2 + $0x38] sm:$0xff]  ;;  %v442_v34 = vpack.c.bf16 %v36_v32, %v35_v31  ;;  %v38_v35 = vld [vmem:[#allocation2 + $0x40] sm:$0xff]  ;;  %v39_v37 = vld [vmem:[#allocation2 + $0x48] sm:$0xff]  ;;  %v167_v49 = vsub.s32 1, %v565_v14 }
  0x17   :  { %438 = vmatprep.subr.bf16.mxu0 %v511_v0  ;;  %v445_v36 = vpack.c.bf16 %v38_v35, %v37_v33  ;;  %v40_v38 = vld [vmem:[#allocation2 + $0x50] sm:$0xff]  ;;  %v41_v40 = vld [vmem:[#allocation2 + $0x58] sm:$0xff]  ;;  %v42_v41 = vld [vmem:[#allocation2 + $0x60] sm:$0xff] }
  0x18   :  { %v57_v17 = vrot.slane %v568_v16, %v56_v15  ;;  %443 = vmatpush3.bf16.msra.mxu1 %v442_v34  ;;  %v448_v39 = vpack.c.bf16 %v40_v38, %v39_v37  ;;  %v451_v43 = vpack.c.bf16 %v42_v41, %v41_v40  ;;  %v168_v50 = vrot.slane %v568_v16, %v167_v49  ;;  %v44_v3 = vld [vmem:[#allocation2 + $0x70] sm:$0xff]  ;;  %v45_v4 = vld [vmem:[#allocation2 + $0x78] sm:$0xff]  ;;  %v46_v6 = vld [vmem:[#allocation2 + $0x80] sm:$0xff] }
  0x19   :  { %444 = vmatprep.subr.bf16.mxu1 %v511_v0  ;;  %v457_v7 = vpack.c.bf16 %v46_v6, %v45_v4 }
  0x1a   :  { %440 = vmatpush3.bf16.msra.mxu0 %v439_v8 }
  0x1b   :  { %400 = vmatprep.subr.mxu0 %v513_v1 }
  0x1c   :  { %446 = vmatpush3.bf16.msra.mxu1 %v445_v36 }
  0x1d   :  { %447 = vmatprep.subr.bf16.mxu1 %v511_v0 }
  0x1e   :  { %401 = vmatpush3.msra.mxu0 %v34_v9 }
  0x1f   :  { %453 = vmatprep.subr.bf16.mxu0 %v511_v0 }
  0x20   :  { %449 = vmatpush3.bf16.msra.mxu1 %v448_v39 }
  0x21   :  { %450 = vmatprep.subr.bf16.mxu1 %v511_v0 }
  0x24   :  { %452 = vmatpush3.bf16.msra.mxu1 %v451_v43 }
  0x87   :  { %v50_v11 = vpop.permute.xlu0 %49 }
  0x88   :  { %v53_v12 = vsel %vm52_vm1, %v28_v10, %v50_v11 }
  0x89   :  { %403 = vmatmul.mubr.msk.f32.vlgmr.msra.gmra.mrb[0].mxu0 %vm58_vm2, %v53_v12 }
  0x8a   :  { %432 = vmatprep.mubr.msk.f32.mxu0 %vm512_vm0, %v513_v1 }
 0x15c   :  { %v128_v18 = vpop.f32.mrb[0].mxu0 }
 0x15d   :  { %v129_v19 = vadd.f32 %v128_v18, %v57_v17  ;;  %v404_v20 = vpop.f32.mrb[1].mxu0  ;;  %v272_v18 = vsub.s32 2, %v565_v14 }
 0x15f   :  { %468 = vtanh.f32 %v129_v19  ;;  %v368_v22 = vmul.f32 -1.442695, %v129_v19  ;;  %v273_v19 = vrot.slane %v568_v16, %v272_v18 }
 0x161   :  { %470 = vpow2.f32 %v368_v22 }
 0x169   :  { %v469_v21 = vpop.eup %468 }
 0x16a   :  { %141 = vrot.lane.b32.xlu0 %v469_v21, %s514_s0 }
 0x16b   :  { %v471_v23 = vpop.eup %470 }
 0x16c   :  { %v135_v24 = vadd.f32 1.0, %v471_v23 }
 0x16e   :  { %472 = vrcp.f32 %v135_v24 }
 0x178   :  { %v473_v25 = vpop.eup %472 }
 0x179   :  { %v139_v28 = vmul.f32 %v473_v25, %v556_v2 }
 0x1dc   :  { %v142_v26 = vpop.permute.xlu0 %141 }
 0x1dd   :  { %v144_v27 = vmul.f32 %v473_v25, %v142_v26 }
 0x1df   :  { %146 = vrot.lane.b32.xlu1 %v144_v27, %s515_s28 }
 0x251   :  { %v147_v29 = vpop.permute.xlu1 %146 }
 0x252   :  { %v574_v30 = vadd.f32 %v147_v29, %v139_v28 }
 0x254   :  { %474 = vtanh.f32 %v574_v30 }
 0x25e   :  { %v475_v42 = vpop.eup %474 }
 0x25f   :  { %152 = vrot.lane.b32.xlu1 %v475_v42, %s514_s0 }
 0x263   :  { %160 = vrot.lane.b32.xlu1 %v556_v2, %s516_s29 }
 0x267   :  { %250 = vrot.lane.b32.xlu1 %v556_v2, %s514_s0  ;;  %v43_v2 = vld [vmem:[#allocation2 + $0x68] sm:$0xff] }
 0x268   :  { %v454_v5 = vpack.c.bf16 %v44_v3, %v43_v2 }
 0x26a   :  { %455 = vmatpush3.bf16.msra.mxu0 %v454_v5 }
 0x26b   :  { %456 = vmatprep.subr.bf16.mxu0 %v511_v0 }
 0x26e   :  { %458 = vmatpush3.bf16.msra.mxu0 %v457_v7 }
 0x2d1   :  { %v153_v44 = vpop.permute.xlu1 %152 }
 0x2d2   :  { %v155_v45 = vmul.f32 %v473_v25, %v153_v44 }
 0x2d4   :  { %157 = vrot.lane.b32.xlu0 %v155_v45, %s515_s28 }
 0x2d5   :  { %v161_v46 = vpop.permute.xlu1 %160 }
 0x2d9   :  { %v251_v61 = vpop.permute.xlu1 %250 }
 0x346   :  { %v158_v47 = vpop.permute.xlu0 %157 }
 0x347   :  { %v164_v48 = vsel %vm163_vm3, %v158_v47, %v161_v46  ;;  %v356_v0 = vsel %vm163_vm3, %v158_v47, %v574_v30 }
 0x348   :  { %422 = vmatmul.mubr.msk.f32.vlgmr.msra.gmra.mrb[0].mxu1 %vm169_vm4, %v164_v48 }
 0x41b   :  { %v239_v51 = vpop.f32.mrb[0].mxu1 }
 0x41c   :  { %v240_v52 = vadd.f32 %v239_v51, %v168_v50  ;;  %v423_v53 = vpop.f32.mrb[1].mxu1 }
 0x41e   :  { %476 = vtanh.f32 %v240_v52  ;;  %v370_v55 = vmul.f32 -1.442695, %v240_v52 }
 0x420   :  { %478 = vpow2.f32 %v370_v55 }
 0x428   :  { %v477_v54 = vpop.eup %476 }
 0x429   :  { %255 = vrot.lane.b32.xlu0 %v477_v54, %s514_s0 }
 0x42a   :  { %v479_v56 = vpop.eup %478 }
 0x42b   :  { %v246_v57 = vadd.f32 1.0, %v479_v56 }
 0x42d   :  { %480 = vrcp.f32 %v246_v57 }
 0x437   :  { %v481_v58 = vpop.eup %480 }
 0x438   :  { %v253_v62 = vmul.f32 %v481_v58, %v251_v61 }
 0x49b   :  { %v256_v59 = vpop.permute.xlu0 %255 }
 0x49c   :  { %v258_v60 = vmul.f32 %v481_v58, %v256_v59 }
 0x49e   :  { %260 = vrot.lane.b32.xlu0 %v258_v60, %s515_s28 }
 0x510   :  { %v261_v63 = vpop.permute.xlu0 %260 }
 0x511   :  { %v263_v1 = vadd.f32 %v261_v63, %v253_v62 }
 0x513   :  { %482 = vtanh.f32 %v263_v1 }
 0x51d   :  { %v483_v8 = vpop.eup %482 }
 0x51e   :  { %266 = vrot.lane.b32.xlu1 %v483_v8, %s514_s0 }
 0x590   :  { %v267_v9 = vpop.permute.xlu1 %266 }
 0x591   :  { %v269_v10 = vmul.f32 %v481_v58, %v267_v9 }
 0x593   :  { %349 = vrot.lane.b32.xlu1 %v269_v10, %s516_s29  ;;  %275 = vrot.lane.b32.xlu0 %v269_v10, %s515_s28 }
 0x597   :  { %353 = vrot.lane.b32.xlu0 %v263_v1, %s514_s0 }
 0x605   :  { %v276_v11 = vpop.permute.xlu0 %275  ;;  %v350_v12 = vpop.permute.xlu1 %349 }
 0x606   :  { %433 = vmatmul.mubr.msk.f32.vlgmr.msra.gmra.mrb[2].mxu0 %vm163_vm3, %v276_v11  ;;  %v357_v13 = vsel %vm169_vm4, %v356_v0, %v350_v12 }
 0x609   :  { %v354_v15 = vpop.permute.xlu0 %353 }
 0x60a   :  { %v359_v17 = vsel %vm358_vm5, %v357_v13, %v354_v15 }
 0x60b   :  { %360 = vst [vmem:[%s612_s3] sm:$0xff] %v359_v17 }
 0x6d9   :  { %v345_v20 = vpop.f32.mrb[2].mxu0 }
 0x6da   :  { %v346_v21 = vadd.f32 %v345_v20, %v273_v19  ;;  %v434_v22 = vpop.f32.mrb[3].mxu0 }
 0x6dc   :  { %361 = vst [vmem:[%s612_s3 + $0x8] sm:$0xff] %v346_v21 }
 0x6dd   :  { %366 = vsyncpa [#allocation3], 1 }

</bundles_post_ra>
